<compile_context>
chip_gen: v6e
topology: v6e:2x2x1
jax: 0.10.0
libtpu: 0.0.40
codegen_flags: <defaults>
</compile_context>

<pallas_src>
import jax
import jax.numpy as jnp
from jax.experimental import pallas as pl
from jax.experimental.pallas import tpu as pltpu


def fm_kernel(x_ref, w_ref, wlin_ref, bias_ref, o_ref):
    """One batch tile, feature-major layout.

    x_ref    : (F, TILE_B) native dtype  dense multi-hot features, batch on the lane axis
    w_ref    : (F, 1)      float32       FM first-order weight (self.w), VMEM-resident
    wlin_ref : (F, 1)      float32       FeaturesLinear embedding weight, VMEM-resident
    bias_ref : (1,)        float32       FeaturesLinear bias, SMEM scalar
    o_ref    : (1, TILE_B) float32       sigmoid(linear + fm), lane-dense store
    """
    x = x_ref[...].astype(jnp.float32)                 # upcast in vregs; DMA ran at native width
    xw = x * w_ref[...]                                 # (F, TILE_B)  VPU, lane-broadcast of w

    # FeaturesLinear as multiply + sublane reduction (no degenerate N=1 MXU matmul).
    linear = jnp.sum(x * wlin_ref[...], axis=0, keepdims=True) + bias_ref[0]   # (1, TILE_B)

    # FactorizationMachine(reduce_sum=False): 0.5 * ((sum_f xw)^2 - sum_f xw^2)
    s = jnp.sum(xw, axis=0, keepdims=True)               # (1, TILE_B)
    ss = jnp.sum(xw * xw, axis=0, keepdims=True)          # (1, TILE_B)
    fm = 0.5 * (s * s - ss)                               # (1, TILE_B)

    o_ref[...] = jax.nn.sigmoid(linear + fm)


def fm_model_forward(x, w, w_lin, bias, *, x_vmem_budget_bytes=16 * 1024 * 1024):
    """x: (B, F) dense multi-hot features (f32 / bf16 / int8, ...) -> (B,) float32."""
    B, F = x.shape
    itemsize = jnp.dtype(x.dtype).itemsize

    # Batch tile sized so the two double-buffered x tiles stay well inside VMEM even on
    # v7x (64 MiB per TensorCore).  Tile must be a multiple of 128 lanes (or the full batch).
    max_rows = max(1, x_vmem_budget_bytes // (2 * F * itemsize))
    tile_b = min(2048, max(128, (max_rows // 128) * 128))
    if B <= tile_b:
        tile_b = B                                   # single full-extent tile, no alignment needed
    b_pad = pl.cdiv(B, tile_b) * tile_b

    # Feature-major layout: batch on the lane (fast) axis.  If the producer can emit x as
    # (F, B) directly, this transpose (and the pad) disappears entirely.
    x_t = x.T                                        # (F, B)
    if b_pad != B:
        x_t = jnp.pad(x_t, ((0, 0), (0, b_pad - B)))  # zero rows -> sigmoid(bias), sliced away

    w2d = w.reshape(F, 1).astype(jnp.float32)
    wlin2d = w_lin.reshape(F, 1).astype(jnp.float32)
    bias1d = bias.reshape(1).astype(jnp.float32)

    out = pl.pallas_call(
        fm_kernel,
        out_shape=jax.ShapeDtypeStruct((1, b_pad), jnp.float32),
        grid_spec=pltpu.PrefetchScalarGridSpec(
            num_scalar_prefetch=0,
            grid=(b_pad // tile_b,),
            in_specs=[
                pl.BlockSpec((F, tile_b), lambda i: (0, i)),          # x: streamed per batch tile
                pl.BlockSpec((F, 1), lambda i: (0, 0)),               # w: VMEM-resident
                pl.BlockSpec((F, 1), lambda i: (0, 0)),               # w_lin: VMEM-resident
                pl.BlockSpec(memory_space=pltpu.MemorySpace.SMEM),    # bias: scalar in SMEM
            ],
            out_specs=pl.BlockSpec((1, tile_b), lambda i: (0, i)),    # lane-dense output block
        ),
        compiler_params=pltpu.CompilerParams(
            dimension_semantics=("parallel",),        # batch tiles shard across TCs on v7x
            vmem_limit_bytes=32 * 1024 * 1024,        # safe on v5e/v6e (128 MiB) and v7x (64 MiB)
        ),
    )(x_t, w2d, wlin2d, bias1d)

    return out[0, :B]                                 # torch .squeeze(1)


def reference_forward(x, w, w_lin, bias):
    """Plain-JAX reference of the PyTorch forward, for the correctness check."""
    xf = x.astype(jnp.float32)
    xw = xf * w[None, :]
    linear_x = xf @ w_lin.reshape(-1, 1) + bias       # (B, 1)
    s = jnp.sum(xw, axis=1)
    ss = jnp.sum(xw ** 2, axis=1)
    fm_x = 0.5 * (s ** 2 - ss)                        # (B,)
    return jax.nn.sigmoid((linear_x + fm_x[:, None])[:, 0])


if __name__ == "__main__":
    # Small, deterministic setup.
    field_dims = (8, 12, 12)          # sum(field_dims) = 32
    F = sum(field_dims)
    B = 8

    key = jax.random.PRNGKey(0)
    k_x, k_w, k_lin = jax.random.split(key, 3)

    # Input: dense multi-hot float features, shape (B, F).
    # TODO(synk): if the real model feeds sparse LongTensor field indices, this needs a
    # gather/embedding-style kernel rather than this dense (B, F) pass.
    x = jax.random.bernoulli(k_x, p=0.3, shape=(B, F)).astype(jnp.float32)

    # self.w: (F, 1) xavier_normal_ -> std = sqrt(2 / (F + 1)); squeezed to (F,).
    w = jax.random.normal(k_w, (F,), dtype=jnp.float32) * jnp.sqrt(2.0 / (F + 1))

    # FeaturesLinear: embedding weight (F,) ~ N(0, 1), bias = 0.
    w_lin = jax.random.normal(k_lin, (F,), dtype=jnp.float32)
    bias = jnp.zeros((1,), dtype=jnp.float32)

    out = fm_model_forward(x, w, w_lin, bias)
    out = jax.block_until_ready(out)

    ref = reference_forward(x, w, w_lin, bias)
    assert out.shape == (B,), out.shape
    assert jnp.allclose(out, ref, atol=1e-5, rtol=1e-5), (out, ref)

    print("KERNEL_OK")
</pallas_src>

<mosaic_0001>
module attributes {stable_mosaic.version = 11 : i64} {
  func.func @fm_kernel(%arg0: i32, %arg1: memref<32x8xf32, #tpu.memory_space<vmem>>, %arg2: memref<32x1xf32, #tpu.memory_space<vmem>>, %arg3: memref<32x1xf32, #tpu.memory_space<vmem>>, %arg4: memref<1xf32, #tpu.memory_space<smem>>, %arg5: memref<1x8xf32, #tpu.memory_space<vmem>>) attributes {dimension_semantics = [#tpu.dimension_semantics<parallel>], iteration_bounds = array<i64: 1>, scalar_prefetch = 0 : i64, scratch_operands = 0 : i64, tpu.core_type = #tpu.core_type<tc>, window_params = [{transform_indices = @transform_0, window_bounds = array<i64: 32, 8>}, {pipeline_mode = #tpu.pipeline_mode<synchronous>, transform_indices = @transform_1, window_bounds = array<i64: 32, 1>}, {pipeline_mode = #tpu.pipeline_mode<synchronous>, transform_indices = @transform_2, window_bounds = array<i64: 32, 1>}, {transform_indices = @transform_3, window_bounds = array<i64: 1>}, {transform_indices = @transform_4, window_bounds = array<i64: 1, 8>}]} {
    %c0 = arith.constant 0 : index
    %c0_0 = arith.constant 0 : index
    %0 = vector.load %arg1[%c0, %c0_0] : memref<32x8xf32, #tpu.memory_space<vmem>>, vector<32x8xf32>
    %c0_1 = arith.constant 0 : index
    %c0_2 = arith.constant 0 : index
    %1 = vector.load %arg2[%c0_1, %c0_2] : memref<32x1xf32, #tpu.memory_space<vmem>>, vector<32x1xf32>
    %2 = vector.broadcast %1 : vector<32x1xf32> to vector<32x8xf32>
    %3 = arith.mulf %0, %2 : vector<32x8xf32>
    %c0_3 = arith.constant 0 : index
    %c0_4 = arith.constant 0 : index
    %4 = vector.load %arg3[%c0_3, %c0_4] : memref<32x1xf32, #tpu.memory_space<vmem>>, vector<32x1xf32>
    %5 = vector.broadcast %4 : vector<32x1xf32> to vector<32x8xf32>
    %6 = arith.mulf %0, %5 : vector<32x8xf32>
    %cst = arith.constant dense<0.000000e+00> : vector<8xf32>
    %7 = vector.multi_reduction <add>, %6, %cst [0] : vector<32x8xf32> to vector<8xf32>
    %8 = vector.shape_cast %7 : vector<8xf32> to vector<1x8xf32>
    %c0_5 = arith.constant 0 : index
    %9 = memref.load %arg4[%c0_5] : memref<1xf32, #tpu.memory_space<smem>>
    %10 = vector.broadcast %9 : f32 to vector<1x8xf32>
    %11 = arith.addf %8, %10 : vector<1x8xf32>
    %cst_6 = arith.constant dense<0.000000e+00> : vector<8xf32>
    %12 = vector.multi_reduction <add>, %3, %cst_6 [0] : vector<32x8xf32> to vector<8xf32>
    %13 = vector.shape_cast %12 : vector<8xf32> to vector<1x8xf32>
    %14 = arith.mulf %3, %3 : vector<32x8xf32>
    %cst_7 = arith.constant dense<0.000000e+00> : vector<8xf32>
    %15 = vector.multi_reduction <add>, %14, %cst_7 [0] : vector<32x8xf32> to vector<8xf32>
    %16 = vector.shape_cast %15 : vector<8xf32> to vector<1x8xf32>
    %17 = arith.mulf %13, %13 : vector<1x8xf32>
    %18 = arith.subf %17, %16 : vector<1x8xf32>
    %cst_8 = arith.constant 5.000000e-01 : f32
    %19 = vector.broadcast %cst_8 : f32 to vector<1x8xf32>
    %20 = arith.mulf %19, %18 : vector<1x8xf32>
    %21 = arith.addf %11, %20 : vector<1x8xf32>
    %22 = arith.negf %21 : vector<1x8xf32>
    %23 = math.exp %22 : vector<1x8xf32>
    %cst_9 = arith.constant 1.000000e+00 : f32
    %24 = vector.broadcast %cst_9 : f32 to vector<1x8xf32>
    %25 = arith.addf %24, %23 : vector<1x8xf32>
    %26 = arith.divf %24, %25 : vector<1x8xf32>
    %c0_10 = arith.constant 0 : index
    %c0_11 = arith.constant 0 : index
    %27 = vector.load %arg5[%c0_10, %c0_11] : memref<1x8xf32, #tpu.memory_space<vmem>>, vector<1x8xf32>
    tpu.vector_store %arg5[%c0_10, %c0_11], %26 {strides = array<i32>} : memref<1x8xf32, #tpu.memory_space<vmem>>, vector<1x8xf32>,
    return
  }
  func.func @transform_0(%arg0: i32) -> (i32, i32) {
    %c0_i32 = arith.constant 0 : i32
    %c0_i32_0 = arith.constant 0 : i32
    return %c0_i32, %arg0 : i32, i32
  }
  func.func @transform_1(%arg0: i32) -> (i32, i32) {
    %c0_i32 = arith.constant 0 : i32
    %c0_i32_0 = arith.constant 0 : i32
    %c0_i32_1 = arith.constant 0 : i32
    return %c0_i32, %c0_i32_0 : i32, i32
  }
  func.func @transform_2(%arg0: i32) -> (i32, i32) {
    %c0_i32 = arith.constant 0 : i32
    %c0_i32_0 = arith.constant 0 : i32
    %c0_i32_1 = arith.constant 0 : i32
    return %c0_i32, %c0_i32_0 : i32, i32
  }
  func.func @transform_3(%arg0: i32) -> i32 {
    %c0_i32 = arith.constant 0 : i32
    %c0_i32_0 = arith.constant 0 : i32
    return %c0_i32 : i32
  }
  func.func @transform_4(%arg0: i32) -> (i32, i32) {
    %c0_i32 = arith.constant 0 : i32
    %c0_i32_0 = arith.constant 0 : i32
    return %c0_i32, %arg0 : i32, i32
  }
}

</mosaic_0001>

<bundles_post_ra>
// kernel: tpu_custom_call.1
= control target key start
LH: loop header
LB: loop body
LE: loop exit
PB: predicated region body
PF: predicated region fallthrough
CT: control target
= control target key end

     0   :  { %v183_v2 = vmov 0   ;;  %s264_s0 = inlined_call_operand.vmem [shape: f32[32,8], index: 0, kind: input, shape index: {}]   ;;  %s265_s1 = inlined_call_operand.vmem [shape: f32[32,1], index: 1, kind: input, shape index: {}]   ;;  %s266_s2 = inlined_call_operand.vmem [shape: f32[32,1], index: 2, kind: input, shape index: {}]   ;;  %s267_s3 = inlined_call_operand.<no memory space> [shape: f32[1], index: 3, kind: input, shape index: {}]   ;;  %s268_s4 = inlined_call_operand.hbm [shape: f32[1,8], index: 4, kind: output, shape index: {}]  }
   0x1   :  { %v25_v0 = vld [vmem:[%s265_s1 + $0x10] sm:$0xff]  ;;  %v23_v1 = vld [vmem:[%s265_s1] sm:$0xff]  ;;  %156 = vset.pattern.permute.xlu1 %v183_v2  ;;  %155 = vset.pattern.permute.xlu0 %v183_v2  ;;  %v26_v3 = vld [vmem:[%s265_s1 + $0x18] sm:$0xff] }
   0x2   :  { %39 = vperm.xlu1 %156, %v25_v0   ;;  %29 = vperm.xlu0 %155, %v23_v1   ;;  %v24_v4 = vld [vmem:[%s265_s1 + $0x8] sm:$0xff] }
   0x3   :  { %10 = vsyncpa [#allocation4], 0  ;;  %v52_v5 = vld [vmem:[%s266_s2 + $0x8] sm:$0xff]  ;;  %v51_v6 = vld [vmem:[%s266_s2] sm:$0xff]  ;;  %vm79_vm0 = vcmask 64512   ;;  %s184_s12 = smov [#allocation3]  }
   0x4   :  { %v54_v7 = vld [vmem:[%s266_s2 + $0x18] sm:$0xff]  ;;  %v53_v8 = vld [vmem:[%s266_s2 + $0x10] sm:$0xff]  ;;  %v19_v9 = vld [vmem:[%s264_s0] sm:$0xff]  ;;  %s144_s13 = sshll.u32 %s184_s12, 4  ;;  %vm136_vm1 = vcmask 57344   ;;  %s145_s13 = int_to_ptr.vmem [resolvable:$true] %s144_s13 }
   0x5   :  { %v21_v11 = vld [vmem:[%s264_s0 + $0x10] sm:$0xff]  ;;  %v22_v14 = vld [vmem:[%s264_s0 + $0x18] sm:$0xff]  ;;  %v20_v15 = vld [vmem:[%s264_s0 + $0x8] sm:$0xff]  ;;  %s161_s14 = scalar_lea.vmem %s145_s13, 16  ;;  %s165_s15 = scalar_lea.vmem %s145_s13, 32 }
   0x6   :  { %44 = vperm.xlu1 %156, %v26_v3   ;;  %34 = vperm.xlu0 %155, %v24_v4   ;;  %p162_p0 = scmp.ne.s32.totalorder %s145_s13, %s161_s14  ;;  %p166_p1 = scmp.lt.s32.totalorder %s145_s13, %s145_s13 }
   0x7   :  { %p167_p2 = scmp.lt.s32.totalorder %s165_s15, %s161_s14 }
   0x9   :  { %p168_p3 = por %p167_p2, %p166_p1 }
   0xa   :  { %62 = vperm.xlu1 %156, %v52_v5   ;;  %57 = vperm.xlu0 %155, %v51_v6  }
   0xb   :  { %p169_p4 = pnand %p168_p3, %p162_p0 }
   0xe   :  { %72 = vperm.xlu1 %156, %v54_v7   ;;  %67 = vperm.xlu0 %155, %v53_v8  }
  0x7d   :  { %v40_v10 = vpop.permute.xlu1 %39  ;;  %v30_v12 = vpop.permute.xlu0 %29 }
  0x7e   :  { %v47_v13 = vmul.f32 %v30_v12, %v19_v9  ;;  %v49_v16 = vmul.f32 %v40_v10, %v21_v11 }
  0x80   :  { %v109_v17 = vmul.f32 %v47_v13, %v47_v13  ;;  %v111_v22 = vmul.f32 %v49_v16, %v49_v16  ;;  %v96_v23 = vsel %vm79_vm0, %v47_v13, 0.0  ;;  %v99_v26 = vsel %vm79_vm0, %v49_v16, 0.0 }
  0x81   :  { %v45_v18 = vpop.permute.xlu1 %44  ;;  %v35_v19 = vpop.permute.xlu0 %34 }
  0x82   :  { %v50_v20 = vmul.f32 %v45_v18, %v22_v14  ;;  %v48_v21 = vmul.f32 %v35_v19, %v20_v15  ;;  %v113_v27 = vsel %vm79_vm0, %v109_v17, 0.0  ;;  %v116_v37 = vsel %vm79_vm0, %v111_v22, 0.0 }
  0x84   :  { %v97_v24 = vsel %vm79_vm0, %v48_v21, 0.0  ;;  %v110_v25 = vmul.f32 %v48_v21, %v48_v21  ;;  %v112_v31 = vmul.f32 %v50_v20, %v50_v20  ;;  %v101_v38 = vsel %vm79_vm0, %v50_v20, 0.0 }
  0x85   :  { %v98_v28 = vadd.f32 %v97_v24, %v96_v23  ;;  %v63_v29 = vpop.permute.xlu1 %62  ;;  %v58_v30 = vpop.permute.xlu0 %57 }
  0x86   :  { %v114_v32 = vsel %vm79_vm0, %v110_v25, 0.0  ;;  %v76_v33 = vmul.f32 %v63_v29, %v20_v15  ;;  %v75_v34 = vmul.f32 %v58_v30, %v19_v9  ;;  %v118_v45 = vsel %vm79_vm0, %v112_v31, 0.0 }
  0x87   :  { %v100_v35 = vadd.f32 %v99_v26, %v98_v28  ;;  %v115_v36 = vadd.f32 %v114_v32, %v113_v27  ;;  %v94_v9 = vstv %s267_s3 }
  0x88   :  { %v81_v39 = vsel %vm79_vm0, %v76_v33, 0.0  ;;  %v80_v40 = vsel %vm79_vm0, %v75_v34, 0.0 }
  0x89   :  { %v102_v41 = vadd.f32 %v101_v38, %v100_v35  ;;  %v117_v42 = vadd.f32 %v116_v37, %v115_v36  ;;  %v73_v43 = vpop.permute.xlu1 %72  ;;  %v68_v44 = vpop.permute.xlu0 %67  ;;  %v82_v50 = vadd.f32 %v81_v39, %v80_v40 }
  0x8a   :  { %v78_v46 = vmul.f32 %v73_v43, %v22_v14  ;;  %v77_v47 = vmul.f32 %v68_v44, %v21_v11 }
  0x8b   :  { %v103_v48 = vrot.slane %v102_v41, 4  ;;  %v119_v49 = vadd.f32 %v118_v45, %v117_v42 }
  0x8c   :  { %v83_v51 = vsel %vm79_vm0, %v77_v47, 0.0  ;;  %v85_v55 = vsel %vm79_vm0, %v78_v46, 0.0 }
  0x8d   :  { %v104_v52 = vadd.f32 %v103_v48, %v102_v41  ;;  %v120_v53 = vrot.slane %v119_v49, 4  ;;  %v84_v54 = vadd.f32 %v83_v51, %v82_v50 }
  0x8f   :  { %v105_v56 = vrot.slane %v104_v52, 2  ;;  %v121_v57 = vadd.f32 %v120_v53, %v119_v49  ;;  %v86_v58 = vadd.f32 %v85_v55, %v84_v54 }
  0x91   :  { %v106_v59 = vadd.f32 %v105_v56, %v104_v52  ;;  %v122_v60 = vrot.slane %v121_v57, 2  ;;  %v87_v61 = vrot.slane %v86_v58, 4 }
  0x93   :  { %v107_v62 = vrot.slane %v106_v59, 1  ;;  %v123_v63 = vadd.f32 %v122_v60, %v121_v57  ;;  %v88_v0 = vadd.f32 %v87_v61, %v86_v58 }
  0x95   :  { %v108_v1 = vadd.f32 %v107_v62, %v106_v59  ;;  %v124_v2 = vrot.slane %v123_v63, 1  ;;  %v89_v3 = vrot.slane %v88_v0, 2 }
  0x97   :  { %v125_v4 = vadd.f32 %v124_v2, %v123_v63  ;;  %v126_v5 = vmul.f32 %v108_v1, %v108_v1  ;;  %v90_v6 = vadd.f32 %v89_v3, %v88_v0 }
  0x99   :  { %v127_v7 = vsub.f32 %v126_v5, %v125_v4  ;;  %v91_v8 = vrot.slane %v90_v6, 1 }
  0x9b   :  { %v92_v10 = vadd.f32 %v91_v8, %v90_v6  ;;  %v128_v11 = vmul.f32 0.5, %v127_v7 }
  0x9d   :  { %v95_v12 = vadd.f32 %v94_v9, %v92_v10 }
  0x9f   :  { %v129_v13 = vadd.f32 %v128_v11, %v95_v12 }
  0xa1   :  { %v152_v14 = vmul.f32 -1.442695, %v129_v13 }
  0xa3   :  { %157 = vpow2.f32 %v152_v14 }
  0xb0   :  { %v158_v15 = vpop.eup %157 }
  0xb1   :  { %v133_v16 = vadd.f32 1.0, %v158_v15 }
  0xb3   :  { %159 = vrcp.f32 %v133_v16 }
  0xc0   :  { %v160_v17 = vpop.eup %159 }
  0xc1   :  { %137 = vst.msk [vmem:[#allocation3] sm:$0x1] %vm136_vm1, %v160_v17 }
  0xc2   :  { %172 = shalt.err (!%p169_p4)
}
  0xc3   :  { %147 = dma.vmem_to_hbm [thread:$0]  %s145_s13, 16, %s268_s4, [#allocation4]  }
  0xc4   :  { %181 = dma.done.wait [#allocation4], 16  }
  0xc5   :  { %182 = vsyncadd [#allocation4], 4294967280 }
  0xc6   :  { %151 = vsyncpa [#allocation4], 1 }

</bundles_post_ra>
